<compile_context>
chip_gen: v6e
topology: v6e:2x2x1
jax: 0.10.0
libtpu: 0.0.40
codegen_flags: <defaults>
</compile_context>

<pallas_src>
import functools

import jax
import jax.numpy as jnp
from jax.experimental import pallas as pl
from jax.experimental.pallas import tpu as pltpu


def _mha_kernel(x_ref, wq_ref, wk_ref, wv_ref, pw_ref, pb_ref, o_ref, *,
                batch_block, seq_len, num_heads, head_size):
    Bblk, T, H, hs = batch_block, seq_len, num_heads, head_size
    C = H * hs
    N = Bblk * T
    # PyTorch module scales by n_embd (C), not head_size -- kept as-is.
    scale = jnp.float32(C ** -0.5)

    x = x_ref[...]                                     # (N, C), f32
    xh = jnp.broadcast_to(x[None], (H, N, C))          # head-batched view (tiny)

    # Q/K/V projections as head-batched matmuls: the head index becomes the
    # leading batch dim directly, so no lane slicing / relayout is ever needed.
    q = jnp.einsum('hnc,hcd->hnd', xh, wq_ref[...],
                   preferred_element_type=jnp.float32)          # (H, N, hs)
    k = jnp.einsum('hnc,hcd->hnd', xh, wk_ref[...],
                   preferred_element_type=jnp.float32)
    v = jnp.einsum('hnc,hcd->hnd', xh, wv_ref[...],
                   preferred_element_type=jnp.float32)

    # (H, Bblk*T, hs) -> (H*Bblk, T, hs): leading-dims-only reshape (lane dim
    # untouched) giving one flat batch dim for the attention matmuls.
    q = q.reshape(H * Bblk, T, hs)
    k = k.reshape(H * Bblk, T, hs)
    v = v.reshape(H * Bblk, T, hs)

    # Additive causal mask, computed once (large finite negative, not -inf).
    row = jax.lax.broadcasted_iota(jnp.int32, (T, T), 0)
    col = jax.lax.broadcasted_iota(jnp.int32, (T, T), 1)
    mask = jnp.where(row >= col, 0.0, -1e30).astype(jnp.float32)   # (T, T)

    # Scores for all (head, batch) pairs in one batched MXU op.
    s = jnp.einsum('bqd,bkd->bqk', q, k,
                   preferred_element_type=jnp.float32) * scale + mask  # (H*Bblk, T, T)

    # Explicit softmax; the divide is an EUP reciprocal (otherwise-idle slot).
    m = jnp.max(s, axis=-1, keepdims=True)
    e = jnp.exp(s - m)
    p = e * pl.reciprocal(jnp.sum(e, axis=-1, keepdims=True), approx=True)

    o = jnp.einsum('bqk,bkd->bqd', p, v,
                   preferred_element_type=jnp.float32)                 # (H*Bblk, T, hs)

    # Output projection as ONE batched matmul against proj_w pre-reshaped to
    # (H, hs, C) in the wrapper, then a cheap sum over the head axis.
    oh = o.reshape(H, N, hs)
    out = jnp.sum(jnp.einsum('hnd,hdc->hnc', oh, pw_ref[...],
                             preferred_element_type=jnp.float32), axis=0)  # (N, C)
    out = out + pb_ref[...]                             # bias (1, C) broadcast
    o_ref[...] = out.astype(o_ref.dtype)


def multi_head_attention(x, wq, wk, wv, proj_w, proj_b, *, batch_block=None):
    """Causal multi-head self-attention forward (eval mode, dropout = identity).

    x: (B, T, C); wq/wk/wv: (H, C, hs) per-head projection weights (so that
    q_h = x @ wq[h]); proj_w: (C, C) with y = x @ proj_w; proj_b: (1, C).

    batch_block: batch elements per grid step.  Default B -> a single grid
    step (fastest at small sizes: per-step overhead is ~0.35 us and there is
    nothing to pipeline).  Only pass batch_block < B (e.g. to spread steps
    over v7x's two TensorCores via the "parallel" axis) once per-step work is
    large -- roughly batch_block*T in the hundreds of rows.
    """
    B, T, C = x.shape
    H, _, hs = wq.shape
    assert H * hs == C

    if batch_block is None:
        batch_block = B                    # one grid step for the whole batch
    assert B % batch_block == 0
    n_blocks = B // batch_block

    x2d = x.reshape(B * T, C)              # flat slab -> contiguous loads/stores
    pw_h = proj_w.reshape(H, hs, C)        # head-major view of the projection
    pb2 = proj_b.reshape(1, C)

    kernel = functools.partial(
        _mha_kernel, batch_block=batch_block, seq_len=T,
        num_heads=H, head_size=hs)

    # Constant-index weights: single-buffer them when the grid has >1 step
    # (no point double-buffering operands whose block never changes).
    weight_kwargs = {"pipeline_mode": pl.Buffered(1)} if n_blocks > 1 else {}

    out2d = pl.pallas_call(
        kernel,
        out_shape=jax.ShapeDtypeStruct((B * T, C), x.dtype),
        grid_spec=pltpu.PrefetchScalarGridSpec(
            num_scalar_prefetch=0,
            grid=(n_blocks,),
            in_specs=[
                pl.BlockSpec((batch_block * T, C), lambda b: (b, 0)),           # x slab
                pl.BlockSpec((H, C, hs), lambda b: (0, 0, 0), **weight_kwargs),  # wq
                pl.BlockSpec((H, C, hs), lambda b: (0, 0, 0), **weight_kwargs),  # wk
                pl.BlockSpec((H, C, hs), lambda b: (0, 0, 0), **weight_kwargs),  # wv
                pl.BlockSpec((H, hs, C), lambda b: (0, 0, 0), **weight_kwargs),  # proj_w
                pl.BlockSpec((1, C), lambda b: (0, 0), **weight_kwargs),         # proj_b
            ],
            out_specs=pl.BlockSpec((batch_block * T, C), lambda b: (b, 0)),
        ),
        compiler_params=pltpu.CompilerParams(
            dimension_semantics=("parallel",)),
    )(x2d, wq, wk, wv, pw_h, pb2)
    return out2d.reshape(B, T, C)


def multi_head_attention_ref(x, wq, wk, wv, proj_w, proj_b):
    """Pure-JAX reference mirroring the PyTorch forward (eval mode)."""
    B, T, C = x.shape
    H = wq.shape[0]
    mask = jnp.tril(jnp.ones((T, T), dtype=jnp.float32)) == 0
    outs = []
    for h in range(H):
        q = x @ wq[h]
        k = x @ wk[h]
        v = x @ wv[h]
        wei = (q @ jnp.swapaxes(k, -1, -2)) * (C ** -0.5)
        wei = jnp.where(mask, -jnp.inf, wei)
        wei = jax.nn.softmax(wei, axis=-1)
        outs.append(wei @ v)
    cat = jnp.concatenate(outs, axis=-1)
    return cat @ proj_w + proj_b


if __name__ == "__main__":
    # hyper_p: n_embd=32, block_size=8, num_heads=4, head_size=8, dropout=0.0
    B, T, C = 2, 8, 32
    H, hs = 4, 8

    key = jax.random.PRNGKey(0)
    kx, kq, kk, kv, kpw, kpb = jax.random.split(key, 6)

    x = jax.random.normal(kx, (B, T, C), dtype=jnp.float32)
    # nn.Linear(C, hs, bias=False) weight is (hs, C); we store its transpose (C, hs).
    wq = jax.random.normal(kq, (H, C, hs), dtype=jnp.float32) * (C ** -0.5)
    wk = jax.random.normal(kk, (H, C, hs), dtype=jnp.float32) * (C ** -0.5)
    wv = jax.random.normal(kv, (H, C, hs), dtype=jnp.float32) * (C ** -0.5)
    # proj: nn.Linear(C, C) -> weight (C, C) (pre-transposed) + bias (1, C)
    proj_w = jax.random.normal(kpw, (C, C), dtype=jnp.float32) * (C ** -0.5)
    proj_b = jax.random.normal(kpb, (1, C), dtype=jnp.float32) * 0.01

    ref = multi_head_attention_ref(x, wq, wk, wv, proj_w, proj_b)

    out = multi_head_attention(x, wq, wk, wv, proj_w, proj_b)
    out = jax.block_until_ready(out)
    assert out.shape == (B, T, C)
    # Tolerance covers the approximate EUP reciprocal in the softmax divide and
    # the different f32 summation grouping of the head-batched projection.
    err = float(jnp.max(jnp.abs(out - ref)))
    assert jnp.allclose(out, ref, atol=5e-3, rtol=5e-3), \
        f"mismatch vs reference (max abs err {err})"

    print("KERNEL_OK")
</pallas_src>

<mosaic_0001>
module attributes {stable_mosaic.version = 11 : i64} {
  func.func @_mha_kernel(%arg0: i32, %arg1: memref<16x32xf32, #tpu.memory_space<vmem>>, %arg2: memref<4x32x8xf32, #tpu.memory_space<vmem>>, %arg3: memref<4x32x8xf32, #tpu.memory_space<vmem>>, %arg4: memref<4x32x8xf32, #tpu.memory_space<vmem>>, %arg5: memref<4x8x32xf32, #tpu.memory_space<vmem>>, %arg6: memref<1x32xf32, #tpu.memory_space<vmem>>, %arg7: memref<16x32xf32, #tpu.memory_space<vmem>>) attributes {dimension_semantics = [#tpu.dimension_semantics<parallel>], iteration_bounds = array<i64: 1>, scalar_prefetch = 0 : i64, scratch_operands = 0 : i64, tpu.core_type = #tpu.core_type<tc>, window_params = [{transform_indices = @transform_0, window_bounds = array<i64: 16, 32>}, {pipeline_mode = #tpu.pipeline_mode<synchronous>, transform_indices = @transform_1, window_bounds = array<i64: 4, 32, 8>}, {pipeline_mode = #tpu.pipeline_mode<synchronous>, transform_indices = @transform_2, window_bounds = array<i64: 4, 32, 8>}, {pipeline_mode = #tpu.pipeline_mode<synchronous>, transform_indices = @transform_3, window_bounds = array<i64: 4, 32, 8>}, {pipeline_mode = #tpu.pipeline_mode<synchronous>, transform_indices = @transform_4, window_bounds = array<i64: 4, 8, 32>}, {pipeline_mode = #tpu.pipeline_mode<synchronous>, transform_indices = @transform_5, window_bounds = array<i64: 1, 32>}, {transform_indices = @transform_6, window_bounds = array<i64: 16, 32>}]} {
    %c0 = arith.constant 0 : index
    %c0_0 = arith.constant 0 : index
    %0 = vector.load %arg1[%c0, %c0_0] : memref<16x32xf32, #tpu.memory_space<vmem>>, vector<16x32xf32>
    %1 = vector.shape_cast %0 : vector<16x32xf32> to vector<1x16x32xf32>
    %2 = vector.shape_cast %1 : vector<1x16x32xf32> to vector<1x16x32xf32>
    %3 = vector.broadcast %2 : vector<1x16x32xf32> to vector<4x16x32xf32>
    %c0_1 = arith.constant 0 : index
    %c0_2 = arith.constant 0 : index
    %c0_3 = arith.constant 0 : index
    %4 = vector.load %arg2[%c0_1, %c0_2, %c0_3] : memref<4x32x8xf32, #tpu.memory_space<vmem>>, vector<4x32x8xf32>
    "tpu.trace_start"() <{level = 10 : i32, message = "hnc,hcd->hnd"}> : () -> ()
    %cst = arith.constant dense<0.000000e+00> : vector<4x16x8xf32>
    %5 = tpu.matmul %3, %4, %cst {dimension_numbers = #tpu.dot_dimension_numbers<[2], [1], [1], [2], [0, 0, 0, 1, 1, 2], [0], [0]>} : vector<4x16x32xf32>, vector<4x32x8xf32>, vector<4x16x8xf32> -> vector<4x16x8xf32>
    "tpu.trace_stop"() : () -> ()
    %c0_4 = arith.constant 0 : index
    %c0_5 = arith.constant 0 : index
    %c0_6 = arith.constant 0 : index
    %6 = vector.load %arg3[%c0_4, %c0_5, %c0_6] : memref<4x32x8xf32, #tpu.memory_space<vmem>>, vector<4x32x8xf32>
    "tpu.trace_start"() <{level = 10 : i32, message = "hnc,hcd->hnd"}> : () -> ()
    %cst_7 = arith.constant dense<0.000000e+00> : vector<4x16x8xf32>
    %7 = tpu.matmul %3, %6, %cst_7 {dimension_numbers = #tpu.dot_dimension_numbers<[2], [1], [1], [2], [0, 0, 0, 1, 1, 2], [0], [0]>} : vector<4x16x32xf32>, vector<4x32x8xf32>, vector<4x16x8xf32> -> vector<4x16x8xf32>
    "tpu.trace_stop"() : () -> ()
    %c0_8 = arith.constant 0 : index
    %c0_9 = arith.constant 0 : index
    %c0_10 = arith.constant 0 : index
    %8 = vector.load %arg4[%c0_8, %c0_9, %c0_10] : memref<4x32x8xf32, #tpu.memory_space<vmem>>, vector<4x32x8xf32>
    "tpu.trace_start"() <{level = 10 : i32, message = "hnc,hcd->hnd"}> : () -> ()
    %cst_11 = arith.constant dense<0.000000e+00> : vector<4x16x8xf32>
    %9 = tpu.matmul %3, %8, %cst_11 {dimension_numbers = #tpu.dot_dimension_numbers<[2], [1], [1], [2], [0, 0, 0, 1, 1, 2], [0], [0]>} : vector<4x16x32xf32>, vector<4x32x8xf32>, vector<4x16x8xf32> -> vector<4x16x8xf32>
    "tpu.trace_stop"() : () -> ()
    %10 = vector.shape_cast %5 : vector<4x16x8xf32> to vector<8x8x8xf32>
    %11 = vector.shape_cast %7 : vector<4x16x8xf32> to vector<8x8x8xf32>
    %12 = vector.shape_cast %9 : vector<4x16x8xf32> to vector<8x8x8xf32>
    %13 = tpu.iota {dimensions = array<i32: 0>} : vector<8x8xi32>
    %14 = tpu.iota {dimensions = array<i32: 1>} : vector<8x8xi32>
    %15 = arith.cmpi sge, %13, %14 : vector<8x8xi32>
    %cst_12 = arith.constant 0.000000e+00 : f32
    %cst_13 = arith.constant -1.000000e+30 : f32
    %16 = vector.broadcast %cst_12 : f32 to vector<8x8xf32>
    %17 = vector.broadcast %cst_13 : f32 to vector<8x8xf32>
    %18 = arith.select %15, %16, %17 : vector<8x8xi1>, vector<8x8xf32>
    "tpu.trace_start"() <{level = 10 : i32, message = "bqd,bkd->bqk"}> : () -> ()
    %cst_14 = arith.constant dense<0.000000e+00> : vector<8x8x8xf32>
    %19 = tpu.matmul %10, %11, %cst_14 {dimension_numbers = #tpu.dot_dimension_numbers<[2], [2], [1], [1], [0, 0, 0, 1, 1, 1], [0], [0]>} : vector<8x8x8xf32>, vector<8x8x8xf32>, vector<8x8x8xf32> -> vector<8x8x8xf32>
    "tpu.trace_stop"() : () -> ()
    %cst_15 = arith.constant 0.176776692 : f32
    %20 = vector.broadcast %cst_15 : f32 to vector<8x8x8xf32>
    %21 = arith.mulf %19, %20 : vector<8x8x8xf32>
    %22 = vector.shape_cast %18 : vector<8x8xf32> to vector<1x8x8xf32>
    %23 = vector.broadcast %22 : vector<1x8x8xf32> to vector<8x8x8xf32>
    %24 = arith.addf %21, %23 : vector<8x8x8xf32>
    %cst_16 = arith.constant dense<0xFF800000> : vector<8x8xf32>
    %25 = vector.multi_reduction <maximumf>, %24, %cst_16 [2] : vector<8x8x8xf32> to vector<8x8xf32>
    %26 = vector.shape_cast %25 : vector<8x8xf32> to vector<8x8x1xf32>
    %27 = vector.broadcast %26 : vector<8x8x1xf32> to vector<8x8x8xf32>
    %28 = arith.subf %24, %27 : vector<8x8x8xf32>
    %29 = math.exp %28 : vector<8x8x8xf32>
    %cst_17 = arith.constant dense<0.000000e+00> : vector<8x8xf32>
    %30 = vector.multi_reduction <add>, %29, %cst_17 [2] : vector<8x8x8xf32> to vector<8x8xf32>
    %31 = vector.shape_cast %30 : vector<8x8xf32> to vector<8x8x1xf32>
    %32 = tpu.reciprocal %31 {approx = true} : vector<8x8x1xf32> -> vector<8x8x1xf32>
    %33 = vector.broadcast %32 : vector<8x8x1xf32> to vector<8x8x8xf32>
    %34 = arith.mulf %29, %33 : vector<8x8x8xf32>
    "tpu.trace_start"() <{level = 10 : i32, message = "bqk,bkd->bqd"}> : () -> ()
    %cst_18 = arith.constant dense<0.000000e+00> : vector<8x8x8xf32>
    %35 = tpu.matmul %34, %12, %cst_18 {dimension_numbers = #tpu.dot_dimension_numbers<[2], [1], [1], [2], [0, 0, 0, 1, 1, 2], [0], [0]>} : vector<8x8x8xf32>, vector<8x8x8xf32>, vector<8x8x8xf32> -> vector<8x8x8xf32>
    "tpu.trace_stop"() : () -> ()
    %36 = vector.shape_cast %35 : vector<8x8x8xf32> to vector<4x16x8xf32>
    %c0_19 = arith.constant 0 : index
    %c0_20 = arith.constant 0 : index
    %c0_21 = arith.constant 0 : index
    %37 = vector.load %arg5[%c0_19, %c0_20, %c0_21] : memref<4x8x32xf32, #tpu.memory_space<vmem>>, vector<4x8x32xf32>
    "tpu.trace_start"() <{level = 10 : i32, message = "hnd,hdc->hnc"}> : () -> ()
    %cst_22 = arith.constant dense<0.000000e+00> : vector<4x16x32xf32>
    %38 = tpu.matmul %36, %37, %cst_22 {dimension_numbers = #tpu.dot_dimension_numbers<[2], [1], [1], [2], [0, 0, 0, 1, 1, 2], [0], [0]>} : vector<4x16x8xf32>, vector<4x8x32xf32>, vector<4x16x32xf32> -> vector<4x16x32xf32>
    "tpu.trace_stop"() : () -> ()
    %cst_23 = arith.constant dense<0.000000e+00> : vector<16x32xf32>
    %39 = vector.multi_reduction <add>, %38, %cst_23 [0] : vector<4x16x32xf32> to vector<16x32xf32>
    %c0_24 = arith.constant 0 : index
    %c0_25 = arith.constant 0 : index
    %40 = vector.load %arg6[%c0_24, %c0_25] : memref<1x32xf32, #tpu.memory_space<vmem>>, vector<1x32xf32>
    %41 = vector.broadcast %40 : vector<1x32xf32> to vector<16x32xf32>
    %42 = arith.addf %39, %41 : vector<16x32xf32>
    %c0_26 = arith.constant 0 : index
    %c0_27 = arith.constant 0 : index
    %43 = vector.load %arg7[%c0_26, %c0_27] : memref<16x32xf32, #tpu.memory_space<vmem>>, vector<16x32xf32>
    tpu.vector_store %arg7[%c0_26, %c0_27], %42 {strides = array<i32>} : memref<16x32xf32, #tpu.memory_space<vmem>>, vector<16x32xf32>,
    return
  }
  func.func @transform_0(%arg0: i32) -> (i32, i32) {
    %c0_i32 = arith.constant 0 : i32
    %c0_i32_0 = arith.constant 0 : i32
    return %arg0, %c0_i32 : i32, i32
  }
  func.func @transform_1(%arg0: i32) -> (i32, i32, i32) {
    %c0_i32 = arith.constant 0 : i32
    %c0_i32_0 = arith.constant 0 : i32
    %c0_i32_1 = arith.constant 0 : i32
    %c0_i32_2 = arith.constant 0 : i32
    return %c0_i32, %c0_i32_0, %c0_i32_1 : i32, i32, i32
  }
  func.func @transform_2(%arg0: i32) -> (i32, i32, i32) {
    %c0_i32 = arith.constant 0 : i32
    %c0_i32_0 = arith.constant 0 : i32
    %c0_i32_1 = arith.constant 0 : i32
    %c0_i32_2 = arith.constant 0 : i32
    return %c0_i32, %c0_i32_0, %c0_i32_1 : i32, i32, i32
  }
  func.func @transform_3(%arg0: i32) -> (i32, i32, i32) {
    %c0_i32 = arith.constant 0 : i32
    %c0_i32_0 = arith.constant 0 : i32
    %c0_i32_1 = arith.constant 0 : i32
    %c0_i32_2 = arith.constant 0 : i32
    return %c0_i32, %c0_i32_0, %c0_i32_1 : i32, i32, i32
  }
  func.func @transform_4(%arg0: i32) -> (i32, i32, i32) {
    %c0_i32 = arith.constant 0 : i32
    %c0_i32_0 = arith.constant 0 : i32
    %c0_i32_1 = arith.constant 0 : i32
    %c0_i32_2 = arith.constant 0 : i32
    return %c0_i32, %c0_i32_0, %c0_i32_1 : i32, i32, i32
  }
  func.func @transform_5(%arg0: i32) -> (i32, i32) {
    %c0_i32 = arith.constant 0 : i32
    %c0_i32_0 = arith.constant 0 : i32
    %c0_i32_1 = arith.constant 0 : i32
    return %c0_i32, %c0_i32_0 : i32, i32
  }
  func.func @transform_6(%arg0: i32) -> (i32, i32) {
    %c0_i32 = arith.constant 0 : i32
    %c0_i32_0 = arith.constant 0 : i32
    return %arg0, %c0_i32 : i32, i32
  }
}

</mosaic_0001>

<bundles_post_ra>
// kernel: tpu_custom_call.1
= control target key start
LH: loop header
LB: loop body
LE: loop exit
PB: predicated region body
PF: predicated region fallthrough
CT: control target
= control target key end

     0   :  { %vm42_vm0 = vcmask 261120   ;;  %s3503_s0 = inlined_call_operand.vmem [shape: f32[16,32], index: 0, kind: input, shape index: {}]   ;;  %s3504_s1 = inlined_call_operand.vmem [shape: f32[4,32,8], index: 1, kind: input, shape index: {}]   ;;  %s3505_s2 = inlined_call_operand.vmem [shape: f32[4,32,8], index: 2, kind: input, shape index: {}]   ;;  %s3506_s3 = inlined_call_operand.vmem [shape: f32[4,32,8], index: 3, kind: input, shape index: {}]   ;;  %s3507_s4 = inlined_call_operand.vmem [shape: f32[4,8,32], index: 4, kind: input, shape index: {}]   ;;  %s3508_s5 = inlined_call_operand.vmem [shape: f32[1,32], index: 5, kind: input, shape index: {}]   ;;  %s3509_s6 = inlined_call_operand.hbm [shape: f32[16,32], index: 6, kind: output, shape index: {}]  }
   0x1   :  { %v29_v0 = vld [vmem:[%s3504_s1 + $0x18] sm:$0xff]  ;;  %v28_v1 = vld [vmem:[%s3504_s1 + $0x10] sm:$0xff]  ;;  %v27_v4 = vld [vmem:[%s3504_s1 + $0x8] sm:$0xff] }
   0x2   :  { %v33_v2 = vld [vmem:[%s3504_s1 + $0x38] sm:$0xff]  ;;  %2826 = vmatprep.subr.mxu0 %v29_v0  ;;  %v32_v3 = vld [vmem:[%s3504_s1 + $0x30] sm:$0xff]  ;;  %v31_v5 = vld [vmem:[%s3504_s1 + $0x28] sm:$0xff] }
   0x3   :  { %2837 = vmatprep.subr.mxu1 %v33_v2  ;;  %2827 = vmatpush3.msra.mxu0 %v29_v0  ;;  %v3180_v6 = vld [vmem:[%s3503_s0] sm:$0xff]  ;;  %v3193_v9 = vld [vmem:[%s3503_s0 + $0x8] sm:$0xff]  ;;  %v37_v10 = vld [vmem:[%s3504_s1 + $0x58] sm:$0xff] }
   0x4   :  { %2838 = vmatpush3.msra.mxu1 %v33_v2  ;;  %2828 = vmatprep.subr.mxu0 %v28_v1  ;;  %v26_v7 = vld [vmem:[%s3504_s1] sm:$0xff]  ;;  %v36_v11 = vld [vmem:[%s3504_s1 + $0x50] sm:$0xff]  ;;  %v41_v12 = vld [vmem:[%s3504_s1 + $0x78] sm:$0xff] }
   0x5   :  { %2839 = vmatprep.subr.mxu1 %v32_v3  ;;  %2829 = vmatpush3.msra.mxu0 %v28_v1  ;;  %v30_v8 = vld [vmem:[%s3504_s1 + $0x20] sm:$0xff]  ;;  %v35_v13 = vld [vmem:[%s3504_s1 + $0x48] sm:$0xff]  ;;  %v40_v14 = vld [vmem:[%s3504_s1 + $0x70] sm:$0xff] }
   0x6   :  { %2840 = vmatpush3.msra.mxu1 %v32_v3  ;;  %2830 = vmatprep.subr.mxu0 %v27_v4 }
   0x7   :  { %2841 = vmatprep.subr.mxu1 %v31_v5  ;;  %2831 = vmatpush3.msra.mxu0 %v27_v4 }
   0x8   :  { %2834 = vmatprep.mubr.msk.f32.mxu0 %vm42_vm0, %v3180_v6  ;;  %2832 = vmatprep.subr.mxu0 %v26_v7 }
   0x9   :  { %2842 = vmatpush3.msra.mxu1 %v31_v5  ;;  %2833 = vmatpush3.msra.mxu0 %v26_v7 }
   0xa   :  { %2843 = vmatprep.subr.mxu1 %v30_v8  ;;  %2835 = vmatmul.mubr.msk.f32.vlgmr.msra.gmra.mxu0 %vm42_vm0, %v3193_v9 }
   0xb   :  { %2848 = vmatprep.subr.mxu0 %v37_v10  ;;  %2844 = vmatpush3.msra.mxu1 %v30_v8 }
   0xc   :  { %2849 = vmatpush3.msra.mxu0 %v37_v10  ;;  %2845 = vmatprep.mubr.msk.f32.mxu1 %vm42_vm0, %v3180_v6 }
   0xd   :  { %2850 = vmatprep.subr.mxu0 %v36_v11 }
   0xe   :  { %11 = vsyncpa [#allocation3], 0  ;;  %2859 = vmatprep.subr.mxu1 %v41_v12  ;;  %2846 = vmatmul.mubr.msk.f32.vlgmr.msra.gmra.mxu1 %vm42_vm0, %v3193_v9  ;;  %v34_v15 = vld [vmem:[%s3504_s1 + $0x40] sm:$0xff]  ;;  %v39_v16 = vld [vmem:[%s3504_s1 + $0x68] sm:$0xff]  ;;  %v3118_v50 = vmov 0.0   ;;  %vm3119_vm1 = vmmov 0   ;;  %v981_v8 = vlaneseq }
   0xf   :  { %2851 = vmatpush3.msra.mxu0 %v36_v11  ;;  %2860 = vmatpush3.msra.mxu1 %v41_v12  ;;  %v38_v17 = vld [vmem:[%s3504_s1 + $0x60] sm:$0xff]  ;;  %v352_v18 = vld [vmem:[%s3505_s2 + $0x18] sm:$0xff]  ;;  %v351_v19 = vld [vmem:[%s3505_s2 + $0x10] sm:$0xff]  ;;  %vm987_vm2 = vcmask 64512   ;;  %s3121_s24 = smov [#allocation2]  }
  0x10   :  { %2852 = vmatprep.subr.mxu0 %v35_v13  ;;  %2861 = vmatprep.subr.mxu1 %v40_v14  ;;  %v356_v20 = vld [vmem:[%s3505_s2 + $0x38] sm:$0xff]  ;;  %v350_v21 = vld [vmem:[%s3505_s2 + $0x8] sm:$0xff]  ;;  %v355_v22 = vld [vmem:[%s3505_s2 + $0x30] sm:$0xff]  ;;  %v982_v11 = vshrl.u32 %v981_v8, 7  ;;  %v984_v12 = vand.u32 127, %v981_v8  ;;  %s2642_s25 = sshll.u32 %s3121_s24, 4  ;;  %s2643_s25 = int_to_ptr.vmem [resolvable:$true] %s2642_s25 }
  0x11   :  { %2853 = vmatpush3.msra.mxu0 %v35_v13  ;;  %2862 = vmatpush3.msra.mxu1 %v40_v14  ;;  %v349_v23 = vld [vmem:[%s3505_s2] sm:$0xff]  ;;  %v354_v24 = vld [vmem:[%s3505_s2 + $0x28] sm:$0xff]  ;;  %v360_v26 = vld [vmem:[%s3505_s2 + $0x58] sm:$0xff]  ;;  %s3096_s26 = scalar_lea.vmem %s2643_s25, 256  ;;  %p3101_p1 = scmp.lt.s32.totalorder %s2643_s25, %s2643_s25 }
  0x12   :  { %2854 = vmatprep.subr.mxu0 %v34_v15  ;;  %2863 = vmatprep.subr.mxu1 %v39_v16  ;;  %v353_v25 = vld [vmem:[%s3505_s2 + $0x20] sm:$0xff]  ;;  %v359_v27 = vld [vmem:[%s3505_s2 + $0x50] sm:$0xff]  ;;  %v364_v28 = vld [vmem:[%s3505_s2 + $0x78] sm:$0xff]  ;;  %vm985_vm3 = vcmp.ge.s32.totalorder %v982_v11, %v984_v12  ;;  %p3097_p0 = scmp.ne.s32.totalorder %s2643_s25, %s3096_s26  ;;  %p3102_p2 = scmp.lt.s32.totalorder %s3096_s26, %s3096_s26 }
  0x13   :  { %2855 = vmatpush3.msra.mxu0 %v34_v15  ;;  %2856 = vmatprep.mubr.msk.f32.mxu0 %vm42_vm0, %v3180_v6  ;;  %v358_v29 = vld [vmem:[%s3505_s2 + $0x48] sm:$0xff]  ;;  %v363_v30 = vld [vmem:[%s3505_s2 + $0x70] sm:$0xff]  ;;  %v357_v31 = vld [vmem:[%s3505_s2 + $0x40] sm:$0xff] }
  0x14   :  { %2864 = vmatpush3.msra.mxu1 %v39_v16  ;;  %2857 = vmatmul.mubr.msk.f32.vlgmr.msra.gmra.mxu0 %vm42_vm0, %v3193_v9  ;;  %v362_v32 = vld [vmem:[%s3505_s2 + $0x68] sm:$0xff]  ;;  %v361_v33 = vld [vmem:[%s3505_s2 + $0x60] sm:$0xff]  ;;  %v672_v34 = vld [vmem:[%s3506_s3 + $0x38] sm:$0xff]  ;;  %p3103_p3 = por %p3102_p2, %p3101_p1 }
  0x15   :  { %2865 = vmatprep.subr.mxu1 %v38_v17  ;;  %2870 = vmatprep.subr.mxu0 %v352_v18  ;;  %v668_v35 = vld [vmem:[%s3506_s3 + $0x18] sm:$0xff]  ;;  %v671_v36 = vld [vmem:[%s3506_s3 + $0x30] sm:$0xff]  ;;  %v670_v38 = vld [vmem:[%s3506_s3 + $0x28] sm:$0xff] }
  0x16   :  { %2866 = vmatpush3.msra.mxu1 %v38_v17  ;;  %2871 = vmatpush3.msra.mxu0 %v352_v18  ;;  %v667_v37 = vld [vmem:[%s3506_s3 + $0x10] sm:$0xff]  ;;  %v666_v39 = vld [vmem:[%s3506_s3 + $0x8] sm:$0xff]  ;;  %v669_v40 = vld [vmem:[%s3506_s3 + $0x20] sm:$0xff]  ;;  %p3104_p4 = pnand %p3103_p3, %p3097_p0 }
  0x17   :  { %2867 = vmatprep.mubr.msk.f32.mxu1 %vm42_vm0, %v3180_v6  ;;  %2872 = vmatprep.subr.mxu0 %v351_v19  ;;  %v665_v41 = vld [vmem:[%s3506_s3] sm:$0xff]  ;;  %v680_v42 = vld [vmem:[%s3506_s3 + $0x78] sm:$0xff]  ;;  %v679_v44 = vld [vmem:[%s3506_s3 + $0x70] sm:$0xff] }
  0x18   :  { %2881 = vmatprep.subr.mxu1 %v356_v20  ;;  %2868 = vmatmul.mubr.msk.f32.vlgmr.msra.gmra.mxu1 %vm42_vm0, %v3193_v9  ;;  %v676_v43 = vld [vmem:[%s3506_s3 + $0x58] sm:$0xff]  ;;  %v675_v45 = vld [vmem:[%s3506_s3 + $0x50] sm:$0xff]  ;;  %v678_v46 = vld [vmem:[%s3506_s3 + $0x68] sm:$0xff] }
  0x19   :  { %2873 = vmatpush3.msra.mxu0 %v351_v19  ;;  %2882 = vmatpush3.msra.mxu1 %v356_v20  ;;  %v674_v47 = vld [vmem:[%s3506_s3 + $0x48] sm:$0xff]  ;;  %v677_v48 = vld [vmem:[%s3506_s3 + $0x60] sm:$0xff] }
  0x1a   :  { %2874 = vmatprep.subr.mxu0 %v350_v21  ;;  %2883 = vmatprep.subr.mxu1 %v355_v22  ;;  %v673_v49 = vld [vmem:[%s3506_s3 + $0x40] sm:$0xff] }
  0x1b   :  { %2875 = vmatpush3.msra.mxu0 %v350_v21  ;;  %2884 = vmatpush3.msra.mxu1 %v355_v22  ;;  %v3120_v21 = vmov -1e+30  }
  0x1c   :  { %2876 = vmatprep.subr.mxu0 %v349_v23  ;;  %2885 = vmatprep.subr.mxu1 %v354_v24  ;;  %v986_v22 = vsel %vm985_vm3, 0.0, %v3120_v21 }
  0x1d   :  { %2877 = vmatpush3.msra.mxu0 %v349_v23  ;;  %2878 = vmatprep.mubr.msk.f32.mxu0 %vm42_vm0, %v3180_v6 }
  0x1e   :  { %2886 = vmatpush3.msra.mxu1 %v354_v24  ;;  %2879 = vmatmul.mubr.msk.f32.vlgmr.msra.gmra.mxu0 %vm42_vm0, %v3193_v9 }
  0x1f   :  { %2887 = vmatprep.subr.mxu1 %v353_v25  ;;  %2892 = vmatprep.subr.mxu0 %v360_v26 }
  0x20   :  { %2888 = vmatpush3.msra.mxu1 %v353_v25  ;;  %2889 = vmatprep.mubr.msk.f32.mxu1 %vm42_vm0, %v3180_v6 }
  0x21   :  { %2893 = vmatpush3.msra.mxu0 %v360_v26  ;;  %2890 = vmatmul.mubr.msk.f32.vlgmr.msra.gmra.mxu1 %vm42_vm0, %v3193_v9 }
  0x22   :  { %2894 = vmatprep.subr.mxu0 %v359_v27  ;;  %2903 = vmatprep.subr.mxu1 %v364_v28 }
  0x23   :  { %2895 = vmatpush3.msra.mxu0 %v359_v27  ;;  %2904 = vmatpush3.msra.mxu1 %v364_v28 }
  0x24   :  { %2896 = vmatprep.subr.mxu0 %v358_v29  ;;  %2905 = vmatprep.subr.mxu1 %v363_v30 }
  0x25   :  { %2897 = vmatpush3.msra.mxu0 %v358_v29  ;;  %2900 = vmatprep.mubr.msk.f32.mxu0 %vm42_vm0, %v3180_v6 }
  0x26   :  { %2898 = vmatprep.subr.mxu0 %v357_v31  ;;  %2906 = vmatpush3.msra.mxu1 %v363_v30 }
  0x27   :  { %2899 = vmatpush3.msra.mxu0 %v357_v31  ;;  %2907 = vmatprep.subr.mxu1 %v362_v32 }
  0x28   :  { %2901 = vmatmul.mubr.msk.f32.vlgmr.msra.gmra.mxu0 %vm42_vm0, %v3193_v9  ;;  %2908 = vmatpush3.msra.mxu1 %v362_v32 }
  0x29   :  { %2909 = vmatprep.subr.mxu1 %v361_v33  ;;  %2911 = vmatprep.mubr.msk.f32.mxu1 %vm42_vm0, %v3180_v6 }
  0x2a   :  { %2910 = vmatpush3.msra.mxu1 %v361_v33  ;;  %2922 = vmatprep.mubr.msk.f32.mxu0 %vm42_vm0, %v3180_v6 }
  0x2b   :  { %2912 = vmatmul.mubr.msk.f32.vlgmr.msra.gmra.mxu1 %vm42_vm0, %v3193_v9  ;;  %2925 = vmatprep.subr.mxu1 %v672_v34 }
  0x2c   :  { %2933 = vmatprep.mubr.msk.f32.mxu1 %vm42_vm0, %v3180_v6  ;;  %2914 = vmatprep.subr.mxu0 %v668_v35 }
  0x2d   :  { %2926 = vmatpush3.msra.mxu1 %v672_v34  ;;  %2915 = vmatpush3.msra.mxu0 %v668_v35 }
  0x2e   :  { %2927 = vmatprep.subr.mxu1 %v671_v36  ;;  %2916 = vmatprep.subr.mxu0 %v667_v37 }
  0x2f   :  { %2928 = vmatpush3.msra.mxu1 %v671_v36  ;;  %2917 = vmatpush3.msra.mxu0 %v667_v37 }
  0x30   :  { %2929 = vmatprep.subr.mxu1 %v670_v38  ;;  %2918 = vmatprep.subr.mxu0 %v666_v39 }
  0x31   :  { %2930 = vmatpush3.msra.mxu1 %v670_v38  ;;  %2919 = vmatpush3.msra.mxu0 %v666_v39 }
  0x32   :  { %2931 = vmatprep.subr.mxu1 %v669_v40  ;;  %2920 = vmatprep.subr.mxu0 %v665_v41 }
  0x33   :  { %2932 = vmatpush3.msra.mxu1 %v669_v40  ;;  %2921 = vmatpush3.msra.mxu0 %v665_v41 }
  0x34   :  { %2934 = vmatmul.mubr.msk.f32.vlgmr.msra.gmra.mxu1 %vm42_vm0, %v3193_v9  ;;  %2947 = vmatprep.subr.mxu1 %v680_v42 }
  0x35   :  { %2923 = vmatmul.mubr.msk.f32.vlgmr.msra.gmra.mxu0 %vm42_vm0, %v3193_v9  ;;  %2936 = vmatprep.subr.mxu0 %v676_v43 }
  0x36   :  { %2948 = vmatpush3.msra.mxu1 %v680_v42  ;;  %2937 = vmatpush3.msra.mxu0 %v676_v43 }
  0x37   :  { %2949 = vmatprep.subr.mxu1 %v679_v44  ;;  %2955 = vmatprep.mubr.msk.f32.mxu1 %vm42_vm0, %v3180_v6 }
  0x38   :  { %2950 = vmatpush3.msra.mxu1 %v679_v44  ;;  %2938 = vmatprep.subr.mxu0 %v675_v45 }
  0x39   :  { %2951 = vmatprep.subr.mxu1 %v678_v46  ;;  %2939 = vmatpush3.msra.mxu0 %v675_v45 }
  0x3a   :  { %2952 = vmatpush3.msra.mxu1 %v678_v46  ;;  %2940 = vmatprep.subr.mxu0 %v674_v47 }
  0x3b   :  { %2953 = vmatprep.subr.mxu1 %v677_v48  ;;  %2941 = vmatpush3.msra.mxu0 %v674_v47 }
  0x3c   :  { %2954 = vmatpush3.msra.mxu1 %v677_v48  ;;  %2942 = vmatprep.subr.mxu0 %v673_v49 }
  0x3d   :  { %2944 = vmatprep.mubr.msk.f32.mxu0 %vm42_vm0, %v3180_v6  ;;  %2943 = vmatpush3.msra.mxu0 %v673_v49 }
  0x3e   :  { %2956 = vmatmul.mubr.msk.f32.vlgmr.msra.gmra.mxu1 %vm42_vm0, %v3193_v9  ;;  %2963 = vmatprep.subr.mxu1 %v3118_v50 }
  0x3f   :  { %2945 = vmatmul.mubr.msk.f32.vlgmr.msra.gmra.mxu0 %vm42_vm0, %v3193_v9  ;;  %2958 = vmatprep.subr.mxu0 %v3118_v50 }
  0x40   :  { %2965 = vmatprep.mubr.msk.f32.mxu1 %vm3119_vm1, %v3118_v50  ;;  %2960 = vmatprep.mubr.msk.f32.mxu0 %vm3119_vm1, %v3118_v50 }
  0xca   :  { %v2836_v51 = vpop.f32.mrf.mxu0 }
  0xcc   :  { %v115_v53 = vpop.f32.mrf.mxu0 }
  0xce   :  { %v2847_v52 = vpop.f32.mrf.mxu1 }
  0xd0   :  { %v190_v55 = vpop.f32.mrf.mxu1 }
  0xd4   :  { %v2858_v54 = vpop.f32.mrf.mxu0 }
  0xd6   :  { %v265_v57 = vpop.f32.mrf.mxu0 }
  0xd8   :  { %v2869_v56 = vpop.f32.mrf.mxu1 }
  0xda   :  { %v340_v59 = vpop.f32.mrf.mxu1 }
  0xde   :  { %v2880_v58 = vpop.f32.mrf.mxu0 }
  0xdf   :  { %2964 = vmatpush3.xpose.msk.msra.mxu1 %vm987_vm2, %v2880_v58 }
  0xe0   :  { %v431_v60 = vpop.f32.mrf.mxu0  ;;  %2973 = vmatprep.subr.mxu1 %v3118_v50 }
  0xe1   :  { %v2891_v61 = vpop.f32.mrf.mxu1  ;;  %2959 = vmatpush3.xpose.msk.msra.mxu0 %vm987_vm2, %v431_v60 }
  0xe2   :  { %2966 = vmatmul.mubr.msk.f32.vlgmr.msra.gmra.mxu1 %vm987_vm2, %v2836_v51  ;;  %2968 = vmatprep.subr.mxu0 %v3118_v50 }
  0xe3   :  { %2974 = vmatpush3.xpose.msk.msra.mxu1 %vm987_vm2, %v2891_v61  ;;  %2975 = vmatprep.mubr.msk.f32.mxu1 %vm3119_vm1, %v3118_v50  ;;  %v506_v62 = vpop.f32.mrf.mxu1 }
  0xe4   :  { %2961 = vmatmul.mubr.msk.f32.vlgmr.msra.gmra.mxu0 %vm987_vm2, %v115_v53  ;;  %2983 = vmatprep.subr.mxu1 %v3118_v50 }
  0xe5   :  { %2969 = vmatpush3.xpose.msk.msra.mxu0 %vm987_vm2, %v506_v62  ;;  %2970 = vmatprep.mubr.msk.f32.mxu0 %vm3119_vm1, %v3118_v50 }
  0xe6   :  { %2976 = vmatmul.mubr.msk.f32.vlgmr.msra.gmra.mxu1 %vm987_vm2, %v2847_v52  ;;  %2978 = vmatprep.subr.mxu0 %v3118_v50 }
  0xe7   :  { %2985 = vmatprep.mubr.msk.f32.mxu1 %vm3119_vm1, %v3118_v50 }
  0xe8   :  { %v2902_v63 = vpop.f32.mrf.mxu0  ;;  %2971 = vmatmul.mubr.msk.f32.vlgmr.msra.gmra.mxu0 %vm987_vm2, %v190_v55 }
  0xe9   :  { %2984 = vmatpush3.xpose.msk.msra.mxu1 %vm987_vm2, %v2902_v63  ;;  %2980 = vmatprep.mubr.msk.f32.mxu0 %vm3119_vm1, %v3118_v50 }
  0xea   :  { %v581_v0 = vpop.f32.mrf.mxu0  ;;  %2993 = vmatprep.subr.mxu1 %v3118_v50 }
  0xeb   :  { %2979 = vmatpush3.xpose.msk.msra.mxu0 %vm987_vm2, %v581_v0  ;;  %v2913_v1 = vpop.f32.mrf.mxu1 }
  0xec   :  { %2986 = vmatmul.mubr.msk.f32.vlgmr.msra.gmra.mxu1 %vm987_vm2, %v2858_v54  ;;  %2988 = vmatprep.subr.mxu0 %v3118_v50 }
  0xed   :  { %2994 = vmatpush3.xpose.msk.msra.mxu1 %vm987_vm2, %v2913_v1  ;;  %v656_v2 = vpop.f32.mrf.mxu1  ;;  %2995 = vmatprep.mubr.msk.f32.mxu1 %vm3119_vm1, %v3118_v50 }
  0xee   :  { %2981 = vmatmul.mubr.msk.f32.vlgmr.msra.gmra.mxu0 %vm987_vm2, %v265_v57  ;;  %3003 = vmatprep.subr.mxu1 %v3118_v50 }
  0xef   :  { %2989 = vmatpush3.xpose.msk.msra.mxu0 %vm987_vm2, %v656_v2  ;;  %2990 = vmatprep.mubr.msk.f32.mxu0 %vm3119_vm1, %v3118_v50 }
  0xf0   :  { %2996 = vmatmul.mubr.msk.f32.vlgmr.msra.gmra.mxu1 %vm987_vm2, %v2869_v56  ;;  %2998 = vmatprep.subr.mxu0 %v3118_v50 }
  0xf1   :  { %3005 = vmatprep.mubr.msk.f32.mxu1 %vm3119_vm1, %v3118_v50 }
  0xf2   :  { %2991 = vmatmul.mubr.msk.f32.vlgmr.msra.gmra.mxu0 %vm987_vm2, %v340_v59 }
  0xf3   :  { %3000 = vmatprep.mubr.msk.f32.mxu0 %vm3119_vm1, %v3118_v50 }
  0xf4   :  { %v3409_v5 = vpop.f32.mrf.mxu1 }
  0xf5   :  { %v2924_v3 = vpop.f32.mrf.mxu0 }
  0xf6   :  { %3004 = vmatpush3.msra.mxu1 %v2924_v3  ;;  %v3411_v6 = vpop.f32.mrf.mxu1 }
  0xf7   :  { %v747_v4 = vpop.f32.mrf.mxu0  ;;  %3013 = vmatprep.subr.mxu1 %v3118_v50 }
  0xf8   :  { %2999 = vmatpush3.msra.mxu0 %v747_v4 }
  0xf9   :  { %3008 = vmatprep.subr.mxu0 %v3118_v50 }
  0xfe   :  { %v3413_v7 = vpop.f32.mrf.mxu1 }
  0xff   :  { %v3415_v9 = vpop.f32.mrf.mxu0 }
 0x100   :  { %v3417_v10 = vpop.f32.mrf.mxu1 }
 0x101   :  { %v3419_v13 = vpop.f32.mrf.mxu0 }
 0x1a2   :  { %v1136_v14 = vpop.f32.mrf.mxu1 }
 0x1a3   :  { %v1597_v17 = vmul.f32 0.17677669, %v1136_v14 }
 0x1a4   :  { %v1060_v15 = vpop.f32.mrf.mxu0  ;;  %v2967_v16 = vpop.f32.mrf.mxu1 }
 0x1a5   :  { %v1596_v18 = vmul.f32 0.17677669, %v1060_v15  ;;  %v1605_v29 = vadd.f32 %v1597_v17, %v986_v22 }
 0x1a6   :  { %v2962_v19 = vpop.f32.mrf.mxu0  ;;  %v1288_v20 = vpop.f32.mrf.mxu1 }
 0x1a7   :  { %v1604_v23 = vadd.f32 %v1596_v18, %v986_v22  ;;  %v1599_v26 = vmul.f32 0.17677669, %v1288_v20  ;;  %v1615_v34 = vsel %vm987_vm2, %v1605_v29, -inf }
 0x1a8   :  { %v1212_v24 = vpop.f32.mrf.mxu0  ;;  %v2977_v25 = vpop.f32.mrf.mxu1 }
 0x1a9   :  { %v1598_v27 = vmul.f32 0.17677669, %v1212_v24  ;;  %v1612_v28 = vsel %vm987_vm2, %v1604_v23, -inf  ;;  %v1607_v36 = vadd.f32 %v1599_v26, %v986_v22 }
 0x1aa   :  { %1613 = vmax.xlane.f32.xlu0 %v1612_v28  ;;  %v2972_v30 = vpop.f32.mrf.mxu0 }
 0x1ab   :  { %v1606_v31 = vadd.f32 %v1598_v27, %v986_v22  ;;  %v1621_v43 = vsel %vm987_vm2, %v1607_v36, -inf }
 0x1ac   :  { %v1440_v32 = vpop.f32.mrf.mxu1 }
 0x1ad   :  { %v1601_v33 = vmul.f32 0.17677669, %v1440_v32  ;;  %v1618_v35 = vsel %vm987_vm2, %v1606_v31, -inf }
 0x1ae   :  { %v1364_v37 = vpop.f32.mrf.mxu0  ;;  %v2987_v38 = vpop.f32.mrf.mxu1  ;;  %1616 = vmax.xlane.f32.xlu0 %v1615_v34  ;;  %1619 = vmax.xlane.f32.xlu1 %v1618_v35 }
 0x1af   :  { %v1600_v39 = vmul.f32 0.17677669, %v1364_v37  ;;  %v1609_v45 = vadd.f32 %v1601_v33, %v986_v22 }
 0x1b0   :  { %v1592_v40 = vpop.f32.mrf.mxu1  ;;  %v2982_v41 = vpop.f32.mrf.mxu0 }
 0x1b1   :  { %v1603_v42 = vmul.f32 0.17677669, %v1592_v40  ;;  %v1608_v44 = vadd.f32 %v1600_v39, %v986_v22  ;;  %v1627_v52 = vsel %vm987_vm2, %v1609_v45, -inf }
 0x1b2   :  { %v1516_v46 = vpop.f32.mrf.mxu0  ;;  %v2997_v47 = vpop.f32.mrf.mxu1  ;;  %1622 = vmax.xlane.f32.xlu1 %v1621_v43 }
 0x1b3   :  { %v1602_v48 = vmul.f32 0.17677669, %v1516_v46  ;;  %v1624_v49 = vsel %vm987_vm2, %v1608_v44, -inf  ;;  %v1611_v54 = vadd.f32 %v1603_v42, %v986_v22 }
 0x1b4   :  { %1625 = vmax.xlane.f32.xlu0 %v1624_v49  ;;  %v2992_v51 = vpop.f32.mrf.mxu0 }
 0x1b5   :  { %v1610_v53 = vadd.f32 %v1602_v48, %v986_v22  ;;  %v1633_v56 = vsel %vm987_vm2, %v1611_v54, -inf }
 0x1b6   :  { %1628 = vmax.xlane.f32.xlu1 %v1627_v52 }
 0x1b7   :  { %v1630_v55 = vsel %vm987_vm2, %v1610_v53, -inf }
 0x1b8   :  { %1631 = vmax.xlane.f32.xlu0 %v1630_v55 }
 0x1ba   :  { %1634 = vmax.xlane.f32.xlu1 %v1633_v56 }
 0x233   :  { %v1614_v57 = vpop.xlane.xlu0 %1613 }
 0x234   :  { %v1636_v58 = vsub.f32 %v1604_v23, %v1614_v57 }
 0x236   :  { %v1644_v59 = vmul.f32 1.442695, %v1636_v58 }
 0x237   :  { %v1617_v60 = vpop.xlane.xlu0 %1616  ;;  %v1620_v61 = vpop.xlane.xlu1 %1619 }
 0x238   :  { %3064 = vpow2.f32 %v1644_v59  ;;  %v1637_v62 = vsub.f32 %v1605_v29, %v1617_v60  ;;  %v1638_v63 = vsub.f32 %v1606_v31, %v1620_v61  ;;  %v2285_v60 = vld [vmem:[%s3507_s4 + $0x8] sm:$0xff] }
 0x23a   :  { %v1646_v0 = vmul.f32 1.442695, %v1637_v62  ;;  %v1648_v1 = vmul.f32 1.442695, %v1638_v63 }
 0x23b   :  { %v1623_v2 = vpop.xlane.xlu1 %1622 }
 0x23c   :  { %3066 = vpow2.f32 %v1646_v0  ;;  %v1639_v3 = vsub.f32 %v1607_v36, %v1623_v2 }
 0x23d   :  { %3068 = vpow2.f32 %v1648_v1  ;;  %v1626_v4 = vpop.xlane.xlu0 %1625 }
 0x23e   :  { %v1650_v8 = vmul.f32 1.442695, %v1639_v3  ;;  %v1640_v11 = vsub.f32 %v1608_v44, %v1626_v4 }
 0x23f   :  { %v1629_v12 = vpop.xlane.xlu1 %1628 }
 0x240   :  { %3070 = vpow2.f32 %v1650_v8  ;;  %v1652_v14 = vmul.f32 1.442695, %v1640_v11  ;;  %v1641_v15 = vsub.f32 %v1609_v45, %v1629_v12 }
 0x241   :  { %v1632_v16 = vpop.xlane.xlu0 %1631 }
 0x242   :  { %3072 = vpow2.f32 %v1652_v14  ;;  %v1654_v17 = vmul.f32 1.442695, %v1641_v15  ;;  %v1642_v18 = vsub.f32 %v1610_v53, %v1632_v16 }
 0x243   :  { %v1635_v19 = vpop.xlane.xlu1 %1634 }
 0x244   :  { %3074 = vpow2.f32 %v1654_v17  ;;  %v1656_v20 = vmul.f32 1.442695, %v1642_v18  ;;  %v1643_v21 = vsub.f32 %v1611_v54, %v1635_v19 }
 0x245   :  { %v3065_v22 = vpop.eup %3064 }
 0x246   :  { %3076 = vpow2.f32 %v1656_v20  ;;  %v1658_v23 = vmul.f32 1.442695, %v1643_v21  ;;  %v1660_v24 = vsel %vm987_vm2, %v3065_v22, 0.0 }
 0x247   :  { %1661 = vadd.xlane.f32.xlu0 %v1660_v24 }
 0x248   :  { %3078 = vpow2.f32 %v1658_v23 }
 0x249   :  { %v3067_v25 = vpop.eup %3066 }
 0x24a   :  { %v3069_v26 = vpop.eup %3068  ;;  %v1663_v27 = vsel %vm987_vm2, %v3067_v25, 0.0 }
 0x24b   :  { %1664 = vadd.xlane.f32.xlu1 %v1663_v27  ;;  %v1666_v28 = vsel %vm987_vm2, %v3069_v26, 0.0 }
 0x24c   :  { %1667 = vadd.xlane.f32.xlu0 %v1666_v28 }
 0x24d   :  { %v3071_v29 = vpop.eup %3070 }
 0x24e   :  { %v1669_v30 = vsel %vm987_vm2, %v3071_v29, 0.0 }
 0x24f   :  { %v3073_v31 = vpop.eup %3072  ;;  %1670 = vadd.xlane.f32.xlu1 %v1669_v30 }
 0x250   :  { %v1672_v32 = vsel %vm987_vm2, %v3073_v31, 0.0 }
 0x251   :  { %v3075_v33 = vpop.eup %3074  ;;  %1673 = vadd.xlane.f32.xlu0 %v1672_v32 }
 0x252   :  { %v1675_v34 = vsel %vm987_vm2, %v3075_v33, 0.0 }
 0x253   :  { %v3077_v35 = vpop.eup %3076  ;;  %1676 = vadd.xlane.f32.xlu1 %v1675_v34 }
 0x254   :  { %v1678_v36 = vsel %vm987_vm2, %v3077_v35, 0.0 }
 0x255   :  { %v3079_v37 = vpop.eup %3078  ;;  %1679 = vadd.xlane.f32.xlu0 %v1678_v36  ;;  %v2709_v36 = vld [vmem:[%s3508_s5] ss:$0 sm:$0xff] }
 0x256   :  { %v1681_v38 = vsel %vm987_vm2, %v3079_v37, 0.0 }
 0x257   :  { %1682 = vadd.xlane.f32.xlu1 %v1681_v38 }
 0x2d0   :  { %v1662_v39 = vpop.xlane.xlu0 %1661 }
 0x2d1   :  { %3080 = vrcp.f32 %v1662_v39 }
 0x2d4   :  { %v1665_v40 = vpop.xlane.xlu1 %1664 }
 0x2d5   :  { %3082 = vrcp.f32 %v1665_v40  ;;  %v1668_v41 = vpop.xlane.xlu0 %1667 }
 0x2d6   :  { %3084 = vrcp.f32 %v1668_v41 }
 0x2d8   :  { %v1671_v42 = vpop.xlane.xlu1 %1670 }
 0x2d9   :  { %3086 = vrcp.f32 %v1671_v42 }
 0x2da   :  { %v1674_v43 = vpop.xlane.xlu0 %1673 }
 0x2db   :  { %3088 = vrcp.f32 %v1674_v43 }
 0x2dc   :  { %v1677_v44 = vpop.xlane.xlu1 %1676 }
 0x2dd   :  { %3090 = vrcp.f32 %v1677_v44 }
 0x2de   :  { %v3081_v45 = vpop.eup %3080  ;;  %v1680_v46 = vpop.xlane.xlu0 %1679 }
 0x2df   :  { %3092 = vrcp.f32 %v1680_v46  ;;  %v1692_v47 = vmul.f32 %v3081_v45, %v3065_v22 }
 0x2e0   :  { %v1683_v48 = vpop.xlane.xlu1 %1682 }
 0x2e1   :  { %3094 = vrcp.f32 %v1683_v48  ;;  %3001 = vmatmul.mubr.msk.f32.vlgmr.msra.gmra.mxu0 %vm987_vm2, %v1692_v47 }
 0x2e2   :  { %v3083_v49 = vpop.eup %3082  ;;  %3009 = vmatpush3.msra.mxu0 %v3411_v6  ;;  %3010 = vmatprep.mubr.msk.f32.mxu0 %vm3119_vm1, %v3118_v50 }
 0x2e3   :  { %v3085_v51 = vpop.eup %3084  ;;  %3018 = vmatprep.subr.mxu0 %v3118_v50  ;;  %v1693_v52 = vmul.f32 %v3083_v49, %v3067_v25 }
 0x2e4   :  { %v1694_v53 = vmul.f32 %v3085_v51, %v3069_v26 }
 0x2e5   :  { %3006 = vmatmul.mubr.msk.f32.vlgmr.msra.gmra.mxu1 %vm987_vm2, %v1693_v52 }
 0x2e6   :  { %v3087_v54 = vpop.eup %3086  ;;  %3011 = vmatmul.mubr.msk.f32.vlgmr.msra.gmra.mxu0 %vm987_vm2, %v1694_v53  ;;  %3014 = vmatpush3.msra.mxu1 %v3409_v5 }
 0x2e7   :  { %3019 = vmatpush3.msra.mxu0 %v3419_v13  ;;  %3015 = vmatprep.mubr.msk.f32.mxu1 %vm3119_vm1, %v3118_v50  ;;  %v1695_v6 = vmul.f32 %v3087_v54, %v3071_v29 }
 0x2e8   :  { %v3089_v55 = vpop.eup %3088  ;;  %3020 = vmatprep.mubr.msk.f32.mxu0 %vm3119_vm1, %v3118_v50  ;;  %3023 = vmatprep.subr.mxu1 %v3118_v50 }
 0x2e9   :  { %3028 = vmatprep.subr.mxu0 %v3118_v50  ;;  %3016 = vmatmul.mubr.msk.f32.vlgmr.msra.gmra.mxu1 %vm987_vm2, %v1695_v6  ;;  %v1696_v56 = vmul.f32 %v3089_v55, %v3073_v31 }
 0x2ea   :  { %v3091_v57 = vpop.eup %3090  ;;  %3024 = vmatpush3.msra.mxu1 %v3415_v9  ;;  %3025 = vmatprep.mubr.msk.f32.mxu1 %vm3119_vm1, %v3118_v50 }
 0x2eb   :  { %3021 = vmatmul.mubr.msk.f32.vlgmr.msra.gmra.mxu0 %vm987_vm2, %v1696_v56  ;;  %3033 = vmatprep.subr.mxu1 %v3118_v50  ;;  %v1697_v5 = vmul.f32 %v3091_v57, %v3075_v33 }
 0x2ec   :  { %v3093_v13 = vpop.eup %3092  ;;  %3029 = vmatpush3.msra.mxu0 %v3417_v10  ;;  %3030 = vmatprep.mubr.msk.f32.mxu0 %vm3119_vm1, %v3118_v50  ;;  %v2284_v10 = vld [vmem:[%s3507_s4] sm:$0xff] }
 0x2ed   :  { %3026 = vmatmul.mubr.msk.f32.vlgmr.msra.gmra.mxu1 %vm987_vm2, %v1697_v5  ;;  %v1698_v58 = vmul.f32 %v3093_v13, %v3077_v35  ;;  %3038 = vmatprep.subr.mxu0 %v2284_v10 }
 0x2ee   :  { %v3095_v59 = vpop.eup %3094  ;;  %3034 = vmatpush3.msra.mxu1 %v3413_v7  ;;  %3035 = vmatprep.mubr.msk.f32.mxu1 %vm3119_vm1, %v3118_v50  ;;  %v2286_v50 = vld [vmem:[%s3507_s4 + $0x10] sm:$0xff]  ;;  %v2287_v7 = vld [vmem:[%s3507_s4 + $0x18] sm:$0xff] }
 0x2ef   :  { %3031 = vmatmul.mubr.msk.f32.vlgmr.msra.gmra.mxu0 %vm987_vm2, %v1698_v58  ;;  %v1699_v9 = vmul.f32 %v3095_v59, %v3079_v37  ;;  %3043 = vmatprep.subr.mxu1 %v2285_v60 }
 0x2f0   :  { %3039 = vmatpush3.msra.mxu0 %v2284_v10 }
 0x2f1   :  { %3036 = vmatmul.mubr.msk.f32.vlgmr.msra.gmra.mxu1 %vm987_vm2, %v1699_v9  ;;  %3048 = vmatprep.subr.mxu0 %v2286_v50 }
 0x2f2   :  { %3044 = vmatpush3.msra.mxu1 %v2285_v60 }
 0x2f3   :  { %3053 = vmatprep.subr.mxu1 %v2287_v7 }
 0x3a1   :  { %v1769_v61 = vpop.f32.mrf.mxu0 }
 0x3a2   :  { %3040 = vmatprep.mubr.msk.f32.mxu0 %vm987_vm2, %v1769_v61 }
 0x3a3   :  { %v3002_v62 = vpop.f32.mrf.mxu0 }
 0x3a5   :  { %v1842_v63 = vpop.f32.mrf.mxu1 }
 0x3a6   :  { %v1915_v0 = vpop.f32.mrf.mxu0  ;;  %3041 = vmatmul.mubr.msk.f32.vlgmr.msra.gmra.mxu0 %vm987_vm2, %v1842_v63 }
 0x3a7   :  { %3045 = vmatprep.mubr.msk.f32.mxu1 %vm987_vm2, %v1915_v0  ;;  %v3007_v1 = vpop.f32.mrf.mxu1  ;;  %3049 = vmatpush3.msra.mxu0 %v2286_v50 }
 0x3a8   :  { %v3012_v2 = vpop.f32.mrf.mxu0 }
 0x3a9   :  { %v1988_v3 = vpop.f32.mrf.mxu1 }
 0x3aa   :  { %3046 = vmatmul.mubr.msk.f32.vlgmr.msra.gmra.mxu1 %vm987_vm2, %v1988_v3 }
 0x3ab   :  { %v2061_v4 = vpop.f32.mrf.mxu0  ;;  %v3017_v8 = vpop.f32.mrf.mxu1  ;;  %3054 = vmatpush3.msra.mxu1 %v2287_v7 }
 0x3ac   :  { %3050 = vmatprep.mubr.msk.f32.mxu0 %vm987_vm2, %v2061_v4 }
 0x3ad   :  { %v3022_v11 = vpop.f32.mrf.mxu0  ;;  %v2134_v12 = vpop.f32.mrf.mxu1 }
 0x3ae   :  { %3051 = vmatmul.mubr.msk.f32.vlgmr.msra.gmra.mxu0 %vm987_vm2, %v2134_v12 }
 0x3af   :  { %v2207_v14 = vpop.f32.mrf.mxu0  ;;  %v3027_v15 = vpop.f32.mrf.mxu1 }
 0x3b0   :  { %3055 = vmatprep.mubr.msk.f32.mxu1 %vm987_vm2, %v2207_v14 }
 0x3b1   :  { %v3032_v16 = vpop.f32.mrf.mxu0  ;;  %v2280_v17 = vpop.f32.mrf.mxu1 }
 0x3b2   :  { %3056 = vmatmul.mubr.msk.f32.vlgmr.msra.gmra.mxu1 %vm987_vm2, %v2280_v17 }
 0x3b3   :  { %v3037_v18 = vpop.f32.mrf.mxu1 }
 0x466   :  { %v3042_v19 = vpop.f32.mrf.mxu0 }
 0x467   :  { %v2619_v25 = vsel %vm42_vm0, %v3042_v19, 0.0 }
 0x468   :  { %v2360_v21 = vpop.f32.mrf.mxu0 }
 0x469   :  { %v2612_v30 = vsel %vm42_vm0, %v2360_v21, 0.0 }
 0x46a   :  { %v3047_v20 = vpop.f32.mrf.mxu1 }
 0x46b   :  { %v2620_v23 = vsel %vm42_vm0, %v3047_v20, 0.0 }
 0x46c   :  { %v2441_v22 = vpop.f32.mrf.mxu1  ;;  %v2621_v28 = vadd.f32 %v2620_v23, %v2619_v25 }
 0x46d   :  { %v2613_v26 = vsel %vm42_vm0, %v2441_v22, 0.0 }
 0x46e   :  { %v3052_v24 = vpop.f32.mrf.mxu0  ;;  %v2614_v32 = vadd.f32 %v2613_v26, %v2612_v30 }
 0x46f   :  { %v2622_v27 = vsel %vm42_vm0, %v3052_v24, 0.0 }
 0x470   :  { %v2522_v29 = vpop.f32.mrf.mxu0  ;;  %v2623_v33 = vadd.f32 %v2622_v27, %v2621_v28 }
 0x471   :  { %v2615_v31 = vsel %vm42_vm0, %v2522_v29, 0.0 }
 0x472   :  { %v3057_v34 = vpop.f32.mrf.mxu1  ;;  %v2616_v37 = vadd.f32 %v2615_v31, %v2614_v32 }
 0x473   :  { %v2624_v35 = vsel %vm42_vm0, %v3057_v34, 0.0 }
 0x474   :  { %v2625_v38 = vadd.f32 %v2624_v35, %v2623_v33  ;;  %v2603_v39 = vpop.f32.mrf.mxu1 }
 0x475   :  { %v2617_v40 = vsel %vm42_vm0, %v2603_v39, 0.0 }
 0x476   :  { %v2634_v41 = vadd.f32 %v2709_v36, %v2625_v38  ;;  %v2618_v42 = vadd.f32 %v2617_v40, %v2616_v37 }
 0x478   :  { %2636 = vst.msk [vmem:[#allocation2 + $0x8] sm:$0xff] %vm42_vm0, %v2634_v41  ;;  %v2633_v43 = vadd.f32 %v2709_v36, %v2618_v42 }
 0x47a   :  { %2635 = vst.msk [vmem:[#allocation2] sm:$0xff] %vm42_vm0, %v2633_v43 }
 0x47b   :  { %3107 = shalt.err (!%p3104_p4)
}
 0x47c   :  { %s3122_s5 = smov 128   ;;  %s3123_s27 = smov 8  }
 0x47d   :  { %2648 = dma.vmem_to_hbm [thread:$0]  %s2643_s25, 256, %s3509_s6, [#allocation3], %s3122_s5, %s3122_s5, %s3123_s27  }
 0x47e   :  { %3116 = dma.done.wait [#allocation3], 256  }
 0x47f   :  { %3117 = vsyncadd [#allocation3], 4294967040 }
 0x480   :  { %2652 = vsyncpa [#allocation3], 1 }

</bundles_post_ra>
